<compile_context>
chip_gen: v7x
topology: tpu7x:2x2x1
jax: 0.10.0
libtpu: 0.0.40
codegen_flags: <defaults>
</compile_context>

<pallas_src>
import math

import numpy as np
import jax
import jax.numpy as jnp
from jax.experimental import pallas as pl
from jax.experimental.pallas import tpu as pltpu

LANE = 128
SUBLANE = 8
VMEM_LIMIT_MIN = 8 << 20

_VMEM_CAP = None
_BUFFERED1_OK = None


# ----------------------------- small helpers --------------------------------


def _round_up(v, m):
    return (v + m - 1) // m * m


def _pad2d(a, rows, cols):
    r, c = a.shape
    return jnp.pad(a, ((0, rows - r), (0, cols - c)))


def _vmem_capacity_bytes():
    """Physical per-core VMEM; conservative 64 MiB (v7x size) if query fails."""
    global _VMEM_CAP
    if _VMEM_CAP is None:
        cap = 0
        try:
            cap = int(getattr(pltpu.get_tpu_info(), "vmem_capacity_bytes", 0) or 0)
        except Exception:
            cap = 0
        _VMEM_CAP = cap if cap > 0 else (64 << 20)
    return _VMEM_CAP


def _copy_probe_kernel(x_ref, o_ref):
    o_ref[...] = x_ref[...]


def _buffered1_supported():
    """Probe once whether pipeline_mode=pl.Buffered(1) compiles + runs here.

    Single-buffering grid-invariant operands halves their VMEM footprint; if
    the installed Pallas rejects it we silently fall back to the default
    double-buffered BlockSpecs (correct, just uses more VMEM)."""
    global _BUFFERED1_OK
    if _BUFFERED1_OK is None:
        try:
            spec = pl.BlockSpec((SUBLANE, LANE), lambda i: (0, 0),
                                pipeline_mode=pl.Buffered(1))
            fn = pl.pallas_call(
                _copy_probe_kernel,
                out_shape=jax.ShapeDtypeStruct((SUBLANE, LANE), jnp.float32),
                grid=(2,),
                in_specs=[spec],
                out_specs=pl.BlockSpec((SUBLANE, LANE), lambda i: (0, 0)))
            jax.block_until_ready(fn(jnp.zeros((SUBLANE, LANE), jnp.float32)))
            _BUFFERED1_OK = True
        except Exception:
            _BUFFERED1_OK = False
    return _BUFFERED1_OK


def _resident_spec(block_shape, index_map):
    """BlockSpec for a grid-invariant operand: single-buffered when supported."""
    if _buffered1_supported():
        return pl.BlockSpec(block_shape, index_map, pipeline_mode=pl.Buffered(1))
    return pl.BlockSpec(block_shape, index_map)


def _clamp_vmem(nbytes, vmem_max):
    return int(min(max(int(nbytes), VMEM_LIMIT_MIN), vmem_max))


# ----------------------------- kernels ---------------------------------------


def _gcn_fused_kernel(x_ref, adj_ref, w1_ref, t1_ref, w2_ref, t2_ref,
                      w3_ref, b3_ref, out_ref):
    """Whole forward with adj fully resident in VMEM (small graphs only)."""
    adj = adj_ref[...]
    adt = adj.dtype                      # adjacency storage dtype (f32 / bf16)

    w1 = w1_ref[...]
    sup = jnp.dot(x_ref[...], w1, preferred_element_type=jnp.float32)
    h = jnp.dot(adj, sup.astype(adt), preferred_element_type=jnp.float32)
    h = jnp.maximum(h + t1_ref[...], 0.0)                 # folded BN1 + ReLU

    w2 = w2_ref[...]
    sup = jnp.dot(h.astype(w2.dtype), w2, preferred_element_type=jnp.float32)
    h = jnp.dot(adj, sup.astype(adt), preferred_element_type=jnp.float32)
    h = jnp.maximum(h + t2_ref[...], 0.0)                 # folded BN2 + ReLU

    # dropout: identity in eval mode
    # TODO(synk): training-mode dropout (pltpu.prng_* mask) not implemented.

    w3 = w3_ref[...]
    sup = jnp.dot(h.astype(w3.dtype), w3, preferred_element_type=jnp.float32)
    out = jnp.dot(adj, sup.astype(adt), preferred_element_type=jnp.float32)
    out_ref[...] = (out + b3_ref[...]).astype(out_ref.dtype)


def _support_kernel(x_ref, w_ref, out_ref):
    """support = x @ w, row-tiled; w stays resident."""
    out_ref[...] = jnp.dot(
        x_ref[...], w_ref[...],
        preferred_element_type=jnp.float32).astype(out_ref.dtype)


def _agg_relu_next_kernel(adj_ref, sup_ref, shift_ref, wn_ref, out_ref, acc_ref):
    """out[i] = relu(sum_k adj[i,k] @ support[k] + shift) @ w_next.

    K-tiled aggregation with an f32 VMEM accumulator; the fused epilogue also
    produces the *next* layer's support so each layer streams adj exactly once.
    """
    k = pl.program_id(1)

    @pl.when(k == 0)
    def _():
        acc_ref[...] = jnp.zeros_like(acc_ref)

    adj = adj_ref[...]
    acc_ref[...] += jnp.dot(adj, sup_ref[...].astype(adj.dtype),
                            preferred_element_type=jnp.float32)

    @pl.when(k == pl.num_programs(1) - 1)
    def _():
        wn = wn_ref[...]
        h = jnp.maximum(acc_ref[...] + shift_ref[...], 0.0)   # folded BN + ReLU
        out_ref[...] = jnp.dot(h.astype(wn.dtype), wn,
                               preferred_element_type=jnp.float32
                               ).astype(out_ref.dtype)


def _agg_final_kernel(adj_ref, sup_ref, bias_ref, out_ref, acc_ref):
    """out[i] = sum_k adj[i,k] @ support[k] + bias (last layer, no activation)."""
    k = pl.program_id(1)

    @pl.when(k == 0)
    def _():
        acc_ref[...] = jnp.zeros_like(acc_ref)

    adj = adj_ref[...]
    acc_ref[...] += jnp.dot(adj, sup_ref[...].astype(adj.dtype),
                            preferred_element_type=jnp.float32)

    @pl.when(k == pl.num_programs(1) - 1)
    def _():
        out_ref[...] = (acc_ref[...] + bias_ref[...]).astype(out_ref.dtype)


# ----------------------------- wrappers --------------------------------------


def _gcn_fused(xp, adjp, w1p, t1p, w2p, t2p, w3p, b3p, *, vmem_limit):
    Np = adjp.shape[0]
    H3p = w3p.shape[1]
    vspec = pl.BlockSpec(memory_space=pltpu.MemorySpace.VMEM)
    return pl.pallas_call(
        _gcn_fused_kernel,
        out_shape=jax.ShapeDtypeStruct((Np, H3p), jnp.float32),
        in_specs=[vspec] * 8,
        out_specs=vspec,
        compiler_params=pltpu.CompilerParams(vmem_limit_bytes=vmem_limit),
    )(xp, adjp, w1p, t1p, w2p, t2p, w3p, b3p)


def _gcn_tiled(xp, adjp, w1p, t1p, w2p, t2p, w3p, b3p, *, tile_m, tile_k,
               act_dtype, vmem_limit):
    Np = adjp.shape[0]
    Fp, H1p = w1p.shape
    H3p = w3p.shape[1]
    n_m = Np // tile_m
    n_k = Np // tile_k
    resident = (n_k == 1)      # whole (Np, H) support stays VMEM-resident

    cp1 = pltpu.CompilerParams(dimension_semantics=("parallel",),
                               vmem_limit_bytes=vmem_limit)
    cp2 = pltpu.CompilerParams(dimension_semantics=("parallel", "arbitrary"),
                               vmem_limit_bytes=vmem_limit)

    # support1 = x @ w1   (row-tiled over x; w1 resident + single-buffered)
    sup = pl.pallas_call(
        _support_kernel,
        out_shape=jax.ShapeDtypeStruct((Np, H1p), act_dtype),
        grid=(n_m,),
        in_specs=[pl.BlockSpec((tile_m, Fp), lambda i: (i, 0)),
                  _resident_spec((Fp, H1p), lambda i: (0, 0))],
        out_specs=pl.BlockSpec((tile_m, H1p), lambda i: (i, 0)),
        compiler_params=cp1,
    )(xp, w1p)

    def agg(kernel, support, extras, out_cols, out_dtype):
        """Streamed aggregation: adj in (tile_m, tile_k) blocks (double-buffered
        DMA overlapping the MXU), support in (tile_k, H) blocks (or fully
        resident when tile_k == Np); epilogue operands resident/single-buffered.
        """
        Hs = support.shape[1]
        sup_spec = (_resident_spec((tile_k, Hs), lambda i, k: (k, 0)) if resident
                    else pl.BlockSpec((tile_k, Hs), lambda i, k: (k, 0)))
        extra_specs = [_resident_spec(e.shape, lambda i, k: (0, 0))
                       for e in extras]
        return pl.pallas_call(
            kernel,
            out_shape=jax.ShapeDtypeStruct((Np, out_cols), out_dtype),
            grid=(n_m, n_k),
            in_specs=[pl.BlockSpec((tile_m, tile_k), lambda i, k: (i, k)),
                      sup_spec] + extra_specs,
            out_specs=pl.BlockSpec((tile_m, out_cols), lambda i, k: (i, 0)),
            scratch_shapes=[pltpu.VMEM((tile_m, Hs), jnp.float32)],
            compiler_params=cp2,
        )(adjp, support, *extras)

    # layer-1 aggregation + folded BN1 + ReLU, fused with layer-2 support
    sup = agg(_agg_relu_next_kernel, sup, [t1p, w2p], w2p.shape[1], act_dtype)
    # layer-2 aggregation + folded BN2 + ReLU (+ eval dropout = id), fused with
    # layer-3 support
    sup = agg(_agg_relu_next_kernel, sup, [t2p, w3p], w3p.shape[1], act_dtype)
    # layer-3 aggregation + bias (no activation); lane-dense f32 output block
    out = agg(_agg_final_kernel, sup, [b3p], H3p, jnp.float32)
    return out


# ----------------------------- top-level forward -----------------------------


def fold_params(params):
    """Fold eval-mode BatchNorm scale into the GCN weights and (bias, shift)
    into one per-feature additive term: exact, removes per-element VPU work."""
    (w1, b1, s1, t1, w2, b2, s2, t2, w3, b3) = params
    return (w1 * s1, b1 * s1 + t1, w2 * s2, b2 * s2 + t2, w3, b3)


def gcn_forward(x, adj, params, *, act_dtype=jnp.float32, adj_dtype=jnp.bfloat16,
                tile_m=256, tile_k=None, mode=None):
    """GCN forward pass.

    mode: None (auto VMEM check) | 'fused' (adj VMEM-resident, whole net in one
    kernel) | 'tiled' (per-layer row/K-tiled streaming kernels).
    adj_dtype: storage dtype of the streamed adjacency (default bf16; adj is the
    dominant HBM traffic and the MXU still accumulates in f32). Pass jnp.float32
    for bit-accurate results, or None to match act_dtype.
    """
    N, nfeat = x.shape
    w1f, t1f, w2f, t2f, w3, b3 = fold_params(params)
    nhid1, nhid2, nout = w1f.shape[1], w2f.shape[1], w3.shape[1]

    if adj_dtype is None:
        adj_dtype = act_dtype
    act_bytes = np.dtype(act_dtype).itemsize
    adj_bytes = np.dtype(adj_dtype).itemsize

    # --- per-generation VMEM budgets (v5e/v6e: 128 MiB, v7x: 64 MiB per TC) ---
    vmem_cap = _vmem_capacity_bytes()
    fused_budget = int(0.45 * vmem_cap)
    tiled_budget = int(0.60 * vmem_cap)
    vmem_max = max(VMEM_LIMIT_MIN, min(int(0.75 * vmem_cap), 112 << 20))

    Fp = _round_up(nfeat, LANE)
    H1p = _round_up(nhid1, LANE)
    H2p = _round_up(nhid2, LANE)
    H3p = _round_up(nout, LANE)
    Hmax = max(H1p, H2p, H3p)
    weight_bytes = (Fp * H1p + H1p * H2p + H2p * H3p) * act_bytes
    weight_max = max(Fp * H1p, H1p * H2p, H2p * H3p) * act_bytes
    Np0 = _round_up(N, LANE)
    resident_bufs = 1 if _buffered1_supported() else 2

    def agg_ws(tm, tk, resident):
        sup_bufs = resident_bufs if resident else 2
        return (2 * tm * tk * adj_bytes                      # adj tile (x2 buf)
                + sup_bufs * tk * Hmax * act_bytes           # support block(s)
                + resident_bufs * (weight_max + Hmax * 4)    # w_next + shift
                + 2 * tm * Hmax * 4                          # out tile (x2 buf)
                + tm * Hmax * 4                              # f32 accumulator
                + (2 << 20))                                 # headroom

    def sup_ws(tm):
        return (2 * tm * Fp * act_bytes + resident_bufs * Fp * H1p * act_bytes
                + 2 * tm * H1p * act_bytes + (2 << 20))

    # --- fused-vs-tiled decision (adj fully resident only if it fits) --------
    fused_est = int(1.2 * (Np0 * Np0 * adj_bytes + Np0 * Fp * act_bytes
                           + weight_bytes + 4 * Np0 * Hmax * 4)) + (2 << 20)
    if mode is None:
        mode = "fused" if fused_est <= fused_budget else "tiled"

    tm = tk = None
    if mode == "fused":
        Np = Np0
    elif mode == "tiled":
        if tile_k is not None:
            # explicit tiling override (testing / tuning)
            tm = _round_up(max(int(tile_m), SUBLANE), SUBLANE)
            tk = _round_up(max(int(tile_k), LANE), LANE)
            Np = _round_up(N, math.lcm(tm, tk, LANE))
            if tk >= Np:
                tk = Np
        elif agg_ws(LANE, Np0, True) <= tiled_budget:
            # resident-support fast path: shrink from the hint to fit, then
            # grow to fill the budget (HBM-bound adj stream -> bigger is better)
            tm = LANE
            while tm * 2 <= max(int(tile_m), LANE):
                tm *= 2
            while tm > LANE and agg_ws(tm, Np0, True) > tiled_budget:
                tm //= 2
            while (tm * 2 <= 1024 and tm * 2 <= Np0
                   and agg_ws(tm * 2, Np0, True) <= tiled_budget):
                tm *= 2
            if tm > Np0:
                tm = Np0
            # avoid gross row over-padding (>25% beyond mandatory 128-alignment)
            while tm > LANE and _round_up(N, math.lcm(tm, LANE)) - Np0 > Np0 // 4:
                tm //= 2
            Np = _round_up(N, math.lcm(tm, LANE))
            tk = Np
        else:
            # K-tiled streaming path: working set independent of N (large graphs)
            tm, tk = 512, 512
            while agg_ws(tm, tk, False) > tiled_budget and (tm > LANE or tk > LANE):
                if tk >= tm and tk > LANE:
                    tk //= 2
                else:
                    tm //= 2
            if tm < 1024 and agg_ws(tm * 2, tk, False) <= tiled_budget:
                tm *= 2
            if tk < 2048 and agg_ws(tm, tk * 2, False) <= tiled_budget:
                tk *= 2
            Np = _round_up(N, math.lcm(tm, tk, LANE))
    else:
        raise ValueError(f"unknown mode: {mode!r}")

    # --- zero-pad to lane-dense (..., 128k) shapes; math stays exact ---------
    # TODO(synk): for repeated inference, pre-pad / pre-cast adj once outside
    # this call -- the pad + cast below is an extra full HBM pass over adj.
    xp = _pad2d(x, Np, Fp).astype(act_dtype)
    adjp = _pad2d(adj, Np, Np).astype(adj_dtype)
    # TODO(synk): int8 (v5e/v6e) / fp8 (v7x) adjacency with per-row scales would
    # further cut the dominant adj HBM traffic; not implemented.
    w1p = _pad2d(w1f, Fp, H1p).astype(act_dtype)
    w2p = _pad2d(w2f, H1p, H2p).astype(act_dtype)
    w3p = _pad2d(w3, H2p, H3p).astype(act_dtype)
    t1p = _pad2d(t1f, 1, H1p).astype(jnp.float32)
    t2p = _pad2d(t2f, 1, H2p).astype(jnp.float32)
    b3p = _pad2d(b3, 1, H3p).astype(jnp.float32)

    if mode == "fused":
        out = _gcn_fused(xp, adjp, w1p, t1p, w2p, t2p, w3p, b3p,
                         vmem_limit=_clamp_vmem(fused_est, vmem_max))
    else:
        vmem_limit = _clamp_vmem(
            1.25 * max(agg_ws(tm, tk, tk == Np), sup_ws(tm)), vmem_max)
        out = _gcn_tiled(xp, adjp, w1p, t1p, w2p, t2p, w3p, b3p,
                         tile_m=tm, tile_k=tk, act_dtype=act_dtype,
                         vmem_limit=vmem_limit)

    return out[:N, :nout]   # strip lane / row padding outside the kernel


# ----------------------------- init + reference ------------------------------


def init_gc_params(key, in_features, out_features):
    """Matches GraphConvolution.reset_parameters: U(-stdv, stdv), stdv=1/sqrt(out)."""
    stdv = 1.0 / math.sqrt(out_features)
    kw, kb = jax.random.split(key)
    w = jax.random.uniform(kw, (in_features, out_features),
                           minval=-stdv, maxval=stdv, dtype=jnp.float32)
    b = jax.random.uniform(kb, (1, out_features),
                           minval=-stdv, maxval=stdv, dtype=jnp.float32)
    return w, b


def init_bn_params(key, num_features, eps=1e-5):
    """BatchNorm1d (eval mode) folded into per-feature scale/shift."""
    kg, kb, km, kv = jax.random.split(key, 4)
    gamma = 1.0 + 0.1 * jax.random.normal(kg, (1, num_features), dtype=jnp.float32)
    beta = 0.1 * jax.random.normal(kb, (1, num_features), dtype=jnp.float32)
    running_mean = 0.1 * jax.random.normal(km, (1, num_features), dtype=jnp.float32)
    running_var = jax.random.uniform(kv, (1, num_features),
                                     minval=0.5, maxval=1.5, dtype=jnp.float32)
    scale = gamma / jnp.sqrt(running_var + eps)
    shift = beta - running_mean * scale
    return scale, shift


def reference_forward(x, adj, params):
    (w1, b1, s1, t1, w2, b2, s2, t2, w3, b3) = params
    h = adj @ (x @ w1) + b1
    h = jnp.maximum(h * s1 + t1, 0.0)
    h = adj @ (h @ w2) + b2
    h = jnp.maximum(h * s2 + t2, 0.0)
    return adj @ (h @ w3) + b3


def _make_graph(kx, ka, n, nfeat):
    x = jax.random.normal(kx, (n, nfeat), dtype=jnp.float32)
    a = jax.random.uniform(ka, (n, n), dtype=jnp.float32)
    a = (a + a.T) * 0.5 + jnp.eye(n, dtype=jnp.float32)
    adj = a / jnp.sum(a, axis=1, keepdims=True)   # row-normalized, self-loops
    return x, adj


if __name__ == "__main__":
    key = jax.random.PRNGKey(0)
    N, nfeat, nhid1, nhid2, nout = 64, 16, 32, 32, 8

    keys = jax.random.split(key, 10)
    x, adj = _make_graph(keys[0], keys[1], N, nfeat)

    w1, b1 = init_gc_params(keys[2], nfeat, nhid1)
    s1, t1 = init_bn_params(keys[3], nhid1)
    w2, b2 = init_gc_params(keys[4], nhid1, nhid2)
    s2, t2 = init_bn_params(keys[5], nhid2)
    w3, b3 = init_gc_params(keys[6], nhid2, nout)
    params = (w1, b1, s1, t1, w2, b2, s2, t2, w3, b3)

    ref = reference_forward(x, adj, params)

    # exact-dtype checks (f32 adjacency) on both execution paths
    out_fused = jax.block_until_ready(
        gcn_forward(x, adj, params, adj_dtype=jnp.float32, mode="fused"))
    assert out_fused.shape == (N, nout)
    assert jnp.allclose(out_fused, ref, rtol=1e-4, atol=1e-4), "fused f32 mismatch"

    out_tiled = jax.block_until_ready(
        gcn_forward(x, adj, params, adj_dtype=jnp.float32, mode="tiled"))
    assert jnp.allclose(out_tiled, ref, rtol=1e-4, atol=1e-4), "tiled f32 mismatch"

    # default path: auto fused/tiled decision, bf16 adjacency, f32 accumulation
    out_def = jax.block_until_ready(gcn_forward(x, adj, params))
    assert jnp.allclose(out_def, ref, rtol=2e-2, atol=2e-2), "bf16-adj mismatch"

    # larger graph forcing the K-tiled (streamed-support, accumulator) path
    N2 = 256
    x2, adj2 = _make_graph(keys[7], keys[8], N2, nfeat)
    ref2 = reference_forward(x2, adj2, params)
    out_kt = jax.block_until_ready(
        gcn_forward(x2, adj2, params, adj_dtype=jnp.float32, mode="tiled",
                    tile_m=128, tile_k=128))
    assert jnp.allclose(out_kt, ref2, rtol=1e-4, atol=1e-4), "k-tiled f32 mismatch"

    print("KERNEL_OK")
</pallas_src>

<mosaic_0001>
module attributes {stable_mosaic.version = 11 : i64} {
  func.func @_copy_probe_kernel(%arg0: i32, %arg1: memref<8x128xf32, #tpu.memory_space<vmem>>, %arg2: memref<8x128xf32, #tpu.memory_space<vmem>>) attributes {dimension_semantics = [#tpu.dimension_semantics<arbitrary>], iteration_bounds = array<i64: 2>, scalar_prefetch = 0 : i64, scratch_operands = 0 : i64, tpu.core_type = #tpu.core_type<tc>, window_params = [{pipeline_mode = #tpu.pipeline_mode<synchronous>, transform_indices = @transform_0, window_bounds = array<i64: 8, 128>}, {pipeline_mode = #tpu.pipeline_mode<synchronous>, transform_indices = @transform_1, window_bounds = array<i64: 8, 128>}]} {
    %c0 = arith.constant 0 : index
    %c0_0 = arith.constant 0 : index
    %0 = vector.load %arg1[%c0, %c0_0] : memref<8x128xf32, #tpu.memory_space<vmem>>, vector<8x128xf32>
    %c0_1 = arith.constant 0 : index
    %c0_2 = arith.constant 0 : index
    %1 = vector.load %arg2[%c0_1, %c0_2] : memref<8x128xf32, #tpu.memory_space<vmem>>, vector<8x128xf32>
    tpu.vector_store %arg2[%c0_1, %c0_2], %0 {strides = array<i32>} : memref<8x128xf32, #tpu.memory_space<vmem>>, vector<8x128xf32>,
    return
  }
  func.func @transform_0(%arg0: i32) -> (i32, i32) {
    %c0_i32 = arith.constant 0 : i32
    %c0_i32_0 = arith.constant 0 : i32
    %c0_i32_1 = arith.constant 0 : i32
    return %c0_i32, %c0_i32_0 : i32, i32
  }
  func.func @transform_1(%arg0: i32) -> (i32, i32) {
    %c0_i32 = arith.constant 0 : i32
    %c0_i32_0 = arith.constant 0 : i32
    %c0_i32_1 = arith.constant 0 : i32
    return %c0_i32, %c0_i32_0 : i32, i32
  }
}

module attributes {stable_mosaic.version = 11 : i64} {
  func.func @_gcn_fused_kernel(%arg0: memref<128x128xf32, #tpu.memory_space<vmem>>, %arg1: memref<128x128xf32, #tpu.memory_space<vmem>>, %arg2: memref<128x128xf32, #tpu.memory_space<vmem>>, %arg3: memref<1x128xf32, #tpu.memory_space<vmem>>, %arg4: memref<128x128xf32, #tpu.memory_space<vmem>>, %arg5: memref<1x128xf32, #tpu.memory_space<vmem>>, %arg6: memref<128x128xf32, #tpu.memory_space<vmem>>, %arg7: memref<1x128xf32, #tpu.memory_space<vmem>>, %arg8: memref<128x128xf32, #tpu.memory_space<vmem>>) attributes {dimension_semantics = [], scalar_prefetch = 0 : i64, scratch_operands = 0 : i64, tpu.core_type = #tpu.core_type<tc>} {
    %c0 = arith.constant 0 : index
    %c0_0 = arith.constant 0 : index
    %0 = vector.load %arg1[%c0, %c0_0] : memref<128x128xf32, #tpu.memory_space<vmem>>, vector<128x128xf32>
    %c0_1 = arith.constant 0 : index
    %c0_2 = arith.constant 0 : index
    %1 = vector.load %arg2[%c0_1, %c0_2] : memref<128x128xf32, #tpu.memory_space<vmem>>, vector<128x128xf32>
    %c0_3 = arith.constant 0 : index
    %c0_4 = arith.constant 0 : index
    %2 = vector.load %arg0[%c0_3, %c0_4] : memref<128x128xf32, #tpu.memory_space<vmem>>, vector<128x128xf32>
    %cst = arith.constant dense<0.000000e+00> : vector<128x128xf32>
    %3 = tpu.matmul %2, %1, %cst {dimension_numbers = #tpu.dot_dimension_numbers<[1], [0], [0], [1], [0, 0, 1, 1], [], []>} : vector<128x128xf32>, vector<128x128xf32>, vector<128x128xf32> -> vector<128x128xf32>
    %cst_5 = arith.constant dense<0.000000e+00> : vector<128x128xf32>
    %4 = tpu.matmul %0, %3, %cst_5 {dimension_numbers = #tpu.dot_dimension_numbers<[1], [0], [0], [1], [0, 0, 1, 1], [], []>} : vector<128x128xf32>, vector<128x128xf32>, vector<128x128xf32> -> vector<128x128xf32>
    %c0_6 = arith.constant 0 : index
    %c0_7 = arith.constant 0 : index
    %5 = vector.load %arg3[%c0_6, %c0_7] : memref<1x128xf32, #tpu.memory_space<vmem>>, vector<1x128xf32>
    %6 = vector.broadcast %5 : vector<1x128xf32> to vector<128x128xf32>
    %7 = arith.addf %4, %6 : vector<128x128xf32>
    %cst_8 = arith.constant 0.000000e+00 : f32
    %8 = vector.broadcast %cst_8 : f32 to vector<128x128xf32>
    %9 = arith.maximumf %7, %8 : vector<128x128xf32>
    %c0_9 = arith.constant 0 : index
    %c0_10 = arith.constant 0 : index
    %10 = vector.load %arg4[%c0_9, %c0_10] : memref<128x128xf32, #tpu.memory_space<vmem>>, vector<128x128xf32>
    %cst_11 = arith.constant dense<0.000000e+00> : vector<128x128xf32>
    %11 = tpu.matmul %9, %10, %cst_11 {dimension_numbers = #tpu.dot_dimension_numbers<[1], [0], [0], [1], [0, 0, 1, 1], [], []>} : vector<128x128xf32>, vector<128x128xf32>, vector<128x128xf32> -> vector<128x128xf32>
    %cst_12 = arith.constant dense<0.000000e+00> : vector<128x128xf32>
    %12 = tpu.matmul %0, %11, %cst_12 {dimension_numbers = #tpu.dot_dimension_numbers<[1], [0], [0], [1], [0, 0, 1, 1], [], []>} : vector<128x128xf32>, vector<128x128xf32>, vector<128x128xf32> -> vector<128x128xf32>
    %c0_13 = arith.constant 0 : index
    %c0_14 = arith.constant 0 : index
    %13 = vector.load %arg5[%c0_13, %c0_14] : memref<1x128xf32, #tpu.memory_space<vmem>>, vector<1x128xf32>
    %14 = vector.broadcast %13 : vector<1x128xf32> to vector<128x128xf32>
    %15 = arith.addf %12, %14 : vector<128x128xf32>
    %cst_15 = arith.constant 0.000000e+00 : f32
    %16 = vector.broadcast %cst_15 : f32 to vector<128x128xf32>
    %17 = arith.maximumf %15, %16 : vector<128x128xf32>
    %c0_16 = arith.constant 0 : index
    %c0_17 = arith.constant 0 : index
    %18 = vector.load %arg6[%c0_16, %c0_17] : memref<128x128xf32, #tpu.memory_space<vmem>>, vector<128x128xf32>
    %cst_18 = arith.constant dense<0.000000e+00> : vector<128x128xf32>
    %19 = tpu.matmul %17, %18, %cst_18 {dimension_numbers = #tpu.dot_dimension_numbers<[1], [0], [0], [1], [0, 0, 1, 1], [], []>} : vector<128x128xf32>, vector<128x128xf32>, vector<128x128xf32> -> vector<128x128xf32>
    %cst_19 = arith.constant dense<0.000000e+00> : vector<128x128xf32>
    %20 = tpu.matmul %0, %19, %cst_19 {dimension_numbers = #tpu.dot_dimension_numbers<[1], [0], [0], [1], [0, 0, 1, 1], [], []>} : vector<128x128xf32>, vector<128x128xf32>, vector<128x128xf32> -> vector<128x128xf32>
    %c0_20 = arith.constant 0 : index
    %c0_21 = arith.constant 0 : index
    %21 = vector.load %arg7[%c0_20, %c0_21] : memref<1x128xf32, #tpu.memory_space<vmem>>, vector<1x128xf32>
    %22 = vector.broadcast %21 : vector<1x128xf32> to vector<128x128xf32>
    %23 = arith.addf %20, %22 : vector<128x128xf32>
    %c0_22 = arith.constant 0 : index
    %c0_23 = arith.constant 0 : index
    %24 = vector.load %arg8[%c0_22, %c0_23] : memref<128x128xf32, #tpu.memory_space<vmem>>, vector<128x128xf32>
    tpu.vector_store %arg8[%c0_22, %c0_23], %23 {strides = array<i32>} : memref<128x128xf32, #tpu.memory_space<vmem>>, vector<128x128xf32>,
    return
  }
}

</mosaic_0001>

<bundles_post_ra>
// kernel: tpu_custom_call.1
= control target key start
LH: loop header
LB: loop body
LE: loop exit
PB: predicated region body
PF: predicated region fallthrough
CT: control target
= control target key end

     0   :  { %6 = vsyncpa [#allocation3], 0  ;;  %s340_s0 = inlined_call_operand.hbm [shape: f32[8,128], index: 0, kind: input, shape index: {}]   ;;  %s341_s1 = inlined_call_operand.hbm [shape: f32[8,128], index: 1, kind: output, shape index: {}]  }
   0x1   :  { %7 = vsyncpa [#allocation4], 0  ;;  %s261_s6 = smov 0  }
   0x2 LB: > { %s144_s7 = sadd.s32 4294967295, %s247_s6   ;;  %p145_p0 = scmp.ge.s32.totalorder %s247_s6, 1  ;;  %s247_s6 = sphi %s261_s6, %s13_s6  }
   0x3   : > { %p60_p1 = scmp.lt.s32.totalorder %s247_s6, 3  ;;  %p275_p3 = scmp.eq.s32.totalorder %s144_s7, 0 }
   0x4   : > { %s249_s10 = smov [#allocation2]   ;;  %s179_s15 = scalar_lea.hbm %s340_s0, 128 }
   0x5   : > { %p269_p2 = pnand %p145_p0, %p60_p1  ;;  %s73_s11 = sshll.u32 %s249_s10, 4  ;;  %s74_s11 = int_to_ptr.vmem [resolvable:$true] %s73_s11 }
   0x6   : > { %s346_s9 = scalar_select %p275_p3, 1, 0 }
   0x7   : > { %s345_s8 = scalar_select %p269_p2, 1, 0 }
   0x8   : > { %p161_p4 = pneg %p269_p2  ;;  %p180_p6 = scmp.ne.s32.totalorder %s340_s0, %s179_s15 }
   0x9   : > { %p186_p10 = scmp.lt.u32.totalorder %s179_s15, %s340_s0 }
   0xa   : > { %p283_p5 = pnand %p275_p3, %p161_p4 }
   0xc   : > { %p181_p7 = pneg %p283_p5 }
   0xe   : > { %p182_p8 = pnand %p181_p7, %p180_p6 }
  0x10   : > { %p183_p9 = pneg %p182_p8 }
  0x12   : > { %p188_p11 = pnand %p186_p10, %p183_p9 }
  0x14   : > { %191 = shalt.err (!%p188_p11)
}
  0x15   : > { %s192_s20 = scalar_lea.vmem %s74_s11, 128  ;;  %p200_p1 = scmp.lt.s32.totalorder %s74_s11, %s74_s11 }
  0x16   : > { %p193_p12 = scmp.ne.s32.totalorder %s74_s11, %s192_s20  ;;  %p201_p4 = scmp.lt.s32.totalorder %s192_s20, %s192_s20 }
  0x18   : > { %p195_p13 = pnand %p193_p12, %p181_p7  ;;  %p202_p3 = por %p201_p4, %p200_p1 }
  0x1a   : > { %p196_p0 = pneg %p195_p13 }
  0x1c   : > { %p203_p2 = pnand %p202_p3, %p196_p0 }
  0x1e   : > { %206 = shalt.err (!%p203_p2)
}
  0x1f   : > { %164 = dma.hbm_to_vmem [thread:$0]  (!%p283_p5), %s340_s0, 128, %s74_s11, [#allocation3]  }
  0x20   : > { %p348_p6 = scmp.ne.s32.totalorder %s345_s8, 0 }
  0x21   : > { %p349_p8 = scmp.ne.s32.totalorder (!%p348_p6), %s346_s9, 0 }
  0x22   : > { %86 = sbr.rel (%p348_p6) target bundleno = 67 (0x43), region = 24 }
  0x29   : > { %238 = dma.done.wait (%p349_p8), [#allocation3], 128  }
  0x2a   : > { %240 = vsyncadd (%p349_p8), [#allocation3], 4294967168  ;;  %s250_s23 = smov [#allocation5]   ;;  %p311_p2 = scmp.eq.s32.totalorder %s144_s7, 1  ;;  %v96_v0 = vld [vmem:[#allocation2] sm:$0xff] }
  0x2b   : > { %s105_s24 = sshll.u32 %s250_s23, 4  ;;  %97 = vst [vmem:[#allocation5] sm:$0xff] %v96_v0  ;;  %s106_s24 = int_to_ptr.vmem [resolvable:$true] %s105_s24 }
  0x2c   : > { %s207_s26 = scalar_lea.vmem %s106_s24, 128  ;;  %p214_p9 = scmp.lt.s32.totalorder %s106_s24, %s106_s24 }
  0x2d   : > { %p208_p3 = scmp.ne.s32.totalorder %s106_s24, %s207_s26  ;;  %p215_p10 = scmp.lt.s32.totalorder %s207_s26, %s207_s26 }
  0x2f   : > { %p209_p5 = pnand %p208_p3, %p311_p2  ;;  %p216_p11 = por %p215_p10, %p214_p9 }
  0x31   : > { %p210_p7 = pneg %p209_p5 }
  0x33   : > { %p217_p12 = pnand %p216_p11, %p210_p7 }
  0x35   : > { %220 = shalt.err (!%p217_p12)
}
  0x36   : > { %s221_s29 = scalar_lea.hbm %s341_s1, 128 }
  0x37   : > { %p222_p13 = scmp.ne.s32.totalorder %s341_s1, %s221_s29  ;;  %p227_p4 = scmp.lt.u32.totalorder %s221_s29, %s341_s1 }
  0x39   : > { %p223_p0 = pnand %p222_p13, %p311_p2 }
  0x3b   : > { %p224_p1 = pneg %p223_p0 }
  0x3d   : > { %p229_p6 = pnand %p227_p4, %p224_p1 }
  0x3f   : > { %232 = shalt.err (!%p229_p6)
}
  0x40   : > { %158 = dma.vmem_to_hbm [thread:$0]  (%p311_p2), %s106_s24, 128, %s341_s1, [#allocation4]  }
  0x41   : > { %242 = dma.done.wait (%p311_p2), [#allocation4], 128  }
  0x42   : > { %244 = vsyncadd (%p311_p2), [#allocation4], 4294967168 }
  0x43 PF: > { %s13_s6 = sadd.s32 1, %s247_s6  }
  0x44   : > { %p10_p8 = scmp.ge.s32.totalorder %s13_s6, 4  }
  0x46   :  { %12 = sbr.rel (!%p10_p8) target bundleno = 2 (0x2), region = 53 }
  0x4d   :  { %118 = vsyncpa [#allocation3], 1 }
  0x4e   :  { %120 = vsyncpa [#allocation3 + $0x1], 1 }
  0x4f   :  { %121 = vsyncpa [#allocation4], 1 }
  0x50   :  { %123 = vsyncpa [#allocation4 + $0x1], 1 }

// kernel: tpu_custom_call.1
= control target key start
LH: loop header
LB: loop body
LE: loop exit
PB: predicated region body
PF: predicated region fallthrough
CT: control target
= control target key end

     0   :  { %13 = vsyncpa [#allocation3], 0  ;;  %s2253_s0 = inlined_call_operand.hbm [shape: f32[128,128], index: 0, kind: input, shape index: {}]   ;;  %s2254_s1 = inlined_call_operand.hbm [shape: f32[128,128], index: 1, kind: input, shape index: {}]   ;;  %s2255_s2 = inlined_call_operand.hbm [shape: f32[128,128], index: 2, kind: input, shape index: {}]   ;;  %s2256_s3 = inlined_call_operand.vmem [shape: f32[1,128], index: 3, kind: input, shape index: {}]   ;;  %s2257_s4 = inlined_call_operand.hbm [shape: f32[128,128], index: 4, kind: input, shape index: {}]   ;;  %s2258_s5 = inlined_call_operand.vmem [shape: f32[1,128], index: 5, kind: input, shape index: {}]   ;;  %s2259_s6 = inlined_call_operand.hbm [shape: f32[128,128], index: 6, kind: input, shape index: {}]   ;;  %s2260_s7 = inlined_call_operand.vmem [shape: f32[1,128], index: 7, kind: input, shape index: {}]   ;;  %s2261_s8 = inlined_call_operand.hbm [shape: f32[128,128], index: 8, kind: output, shape index: {}]  }
   0x1   :  { %14 = vsyncpa [#allocation6], 0 }
   0x2   :  { %15 = vsyncpa [#allocation9], 0 }
   0x3   :  { %16 = vsyncpa [#allocation4], 0  ;;  %s2007_s27 = smov [#allocation5]   ;;  %s2008_s29 = smov [#allocation8]  }
   0x4   :  { %s34_s28 = sshll.u32 %s2007_s27, 4  ;;  %s60_s30 = sshll.u32 %s2008_s29, 4  ;;  %s35_s28 = int_to_ptr.vmem [resolvable:$true] %s34_s28  ;;  %s2060_s30 = int_to_ptr.vmem [resolvable:$true] %s60_s30 }
   0x5   :  { %s1867_s11 = scalar_lea.hbm %s2254_s1, 2048 }
   0x6   :  { %p1868_p0 = scmp.ne.s32.totalorder %s2254_s1, %s1867_s11  ;;  %p1871_p1 = scmp.lt.u32.totalorder %s1867_s11, %s2254_s1 }
   0x8   :  { %p1873_p2 = pnand %p1871_p1, %p1868_p0 }
   0xa   :  { %1876 = shalt.err (!%p1873_p2)
}
   0xb   :  { %s1877_s16 = scalar_lea.vmem %s35_s28, 2048  ;;  %p1882_p4 = scmp.lt.s32.totalorder %s35_s28, %s35_s28 }
   0xc   :  { %p1878_p3 = scmp.ne.s32.totalorder %s35_s28, %s1877_s16  ;;  %p1883_p5 = scmp.lt.s32.totalorder %s1877_s16, %s1877_s16 }
   0xe   :  { %p1884_p6 = por %p1883_p5, %p1882_p4 }
  0x10   :  { %p1885_p7 = pnand %p1884_p6, %p1878_p3 }
  0x12   :  { %1888 = shalt.err (!%p1885_p7)
}
  0x13   :  { %s2009_s17 = smov 128   ;;  %s2010_s18 = smov 8  }
  0x14   :  { %40 = dma.hbm_to_vmem [thread:$0]  %s2254_s1, 2048, %s35_s28, [#allocation6], %s2009_s17, %s2009_s17, %s2010_s18  }
  0x15   :  { %s1889_s23 = scalar_lea.hbm %s2257_s4, 2048 }
  0x16   :  { %p1890_p8 = scmp.ne.s32.totalorder %s2257_s4, %s1889_s23  ;;  %p1893_p9 = scmp.lt.u32.totalorder %s1889_s23, %s2257_s4 }
  0x18   :  { %p1895_p10 = pnand %p1893_p9, %p1890_p8 }
  0x1a   :  { %1898 = shalt.err (!%p1895_p10)
}
  0x1b   :  { %s1899_s29 = scalar_lea.vmem %s2060_s30, 2048  ;;  %p1904_p12 = scmp.lt.s32.totalorder %s2060_s30, %s2060_s30 }
  0x1c   :  { %p1900_p11 = scmp.ne.s32.totalorder %s2060_s30, %s1899_s29  ;;  %p1905_p13 = scmp.lt.s32.totalorder %s1899_s29, %s1899_s29 }
  0x1e   :  { %p1906_p0 = por %p1905_p13, %p1904_p12 }
  0x20   :  { %p1907_p1 = pnand %p1906_p0, %p1900_p11 }
  0x22   :  { %1910 = shalt.err (!%p1907_p1)
}
  0x23   :  { %66 = dma.hbm_to_vmem [thread:$0]  %s2257_s4, 2048, %s2060_s30, [#allocation9], %s2009_s17, %s2009_s17, %s2010_s18  }
  0x24   :  { %s2011_s9 = smov [#allocation2]   ;;  %s2012_s11 = smov [#allocation7]  }
  0x25   :  { %s22_s10 = sshll.u32 %s2011_s9, 4  ;;  %s46_s12 = sshll.u32 %s2012_s11, 4  ;;  %s23_s10 = int_to_ptr.vmem [resolvable:$true] %s22_s10  ;;  %s2097_s12 = int_to_ptr.vmem [resolvable:$true] %s46_s12 }
  0x26   :  { %s1911_s15 = scalar_lea.hbm %s2253_s0, 2048 }
  0x27   :  { %p1912_p2 = scmp.ne.s32.totalorder %s2253_s0, %s1911_s15  ;;  %p1915_p3 = scmp.lt.u32.totalorder %s1911_s15, %s2253_s0 }
  0x29   :  { %p1917_p4 = pnand %p1915_p3, %p1912_p2 }
  0x2b   :  { %1920 = shalt.err (!%p1917_p4)
}
  0x2c   :  { %s1921_s4 = scalar_lea.vmem %s23_s10, 2048  ;;  %p1926_p6 = scmp.lt.s32.totalorder %s23_s10, %s23_s10 }
  0x2d   :  { %p1922_p5 = scmp.ne.s32.totalorder %s23_s10, %s1921_s4  ;;  %p1927_p7 = scmp.lt.s32.totalorder %s1921_s4, %s1921_s4 }
  0x2f   :  { %p1928_p8 = por %p1927_p7, %p1926_p6 }
  0x31   :  { %p1929_p9 = pnand %p1928_p8, %p1922_p5 }
  0x33   :  { %1932 = shalt.err (!%p1929_p9)
}
  0x34   :  { %28 = dma.hbm_to_vmem [thread:$0]  %s2253_s0, 2048, %s23_s10, [#allocation3], %s2009_s17, %s2009_s17, %s2010_s18  }
  0x35   :  { %s1933_s25 = scalar_lea.hbm %s2255_s2, 2048 }
  0x36   :  { %p1934_p10 = scmp.ne.s32.totalorder %s2255_s2, %s1933_s25  ;;  %p1937_p11 = scmp.lt.u32.totalorder %s1933_s25, %s2255_s2 }
  0x38   :  { %p1939_p12 = pnand %p1937_p11, %p1934_p10 }
  0x3a   :  { %1942 = shalt.err (!%p1939_p12)
}
  0x3b   :  { %s1943_s28 = scalar_lea.vmem %s2097_s12, 2048  ;;  %p1948_p0 = scmp.lt.s32.totalorder %s2097_s12, %s2097_s12 }
  0x3c   :  { %p1944_p13 = scmp.ne.s32.totalorder %s2097_s12, %s1943_s28  ;;  %p1949_p1 = scmp.lt.s32.totalorder %s1943_s28, %s1943_s28 }
  0x3e   :  { %p1950_p2 = por %p1949_p1, %p1948_p0 }
  0x40   :  { %p1951_p3 = pnand %p1950_p2, %p1944_p13 }
  0x42   :  { %1954 = shalt.err (!%p1951_p3)
}
  0x43   :  { %52 = dma.hbm_to_vmem [thread:$0]  %s2255_s2, 2048, %s2097_s12, [#allocation6], %s2009_s17, %s2009_s17, %s2010_s18  }
  0x44   :  { %s2013_s10 = smov [#allocation10]   ;;  %s1955_s15 = scalar_lea.hbm %s2259_s6, 2048 }
  0x45   :  { %s74_s11 = sshll.u32 %s2013_s10, 4  ;;  %p1956_p4 = scmp.ne.s32.totalorder %s2259_s6, %s1955_s15  ;;  %s75_s11 = int_to_ptr.vmem [resolvable:$true] %s74_s11 }
  0x46   :  { %p1959_p5 = scmp.lt.u32.totalorder %s1955_s15, %s2259_s6 }
  0x48   :  { %p1961_p6 = pnand %p1959_p5, %p1956_p4 }
  0x4a   :  { %1964 = shalt.err (!%p1961_p6)
}
  0x4b   :  { %s1965_s4 = scalar_lea.vmem %s75_s11, 2048  ;;  %p1970_p8 = scmp.lt.s32.totalorder %s75_s11, %s75_s11 }
  0x4c   :  { %p1966_p7 = scmp.ne.s32.totalorder %s75_s11, %s1965_s4  ;;  %p1971_p9 = scmp.lt.s32.totalorder %s1965_s4, %s1965_s4 }
  0x4e   :  { %p1972_p10 = por %p1971_p9, %p1970_p8 }
  0x50   :  { %p1973_p11 = pnand %p1972_p10, %p1966_p7 }
  0x52   :  { %1976 = shalt.err (!%p1973_p11)
}
  0x53   :  { %80 = dma.hbm_to_vmem [thread:$0]  %s2259_s6, 2048, %s75_s11, [#allocation9], %s2009_s17, %s2009_s17, %s2010_s18  }
  0x54   :  { %1999 = dma.done.wait [#allocation3], 2048  }
  0x55   :  { %2000 = vsyncadd [#allocation3], 4294965248 }
  0x56   :  { %2001 = dma.done.wait [#allocation6], 4096  }
  0x57   :  { %2002 = vsyncadd [#allocation6], 4294963200 }
  0x58   :  { %2003 = dma.done.wait [#allocation9], 4096  }
  0x59   :  { %2004 = vsyncadd [#allocation9], 4294963200  ;;  %v114_v0 = vld [vmem:[#allocation7] sm:$0xff]  ;;  %v115_v1 = vld [vmem:[#allocation7 + $0x8] sm:$0xff] }
  0x5a   :  { %v116_v2 = vld [vmem:[#allocation7 + $0x10] sm:$0xff]  ;;  %v1667_v3 = vpack.c.bf16 %v115_v1, %v114_v0  ;;  %v117_v4 = vld [vmem:[#allocation7 + $0x18] sm:$0xff]  ;;  %v118_v6 = vld [vmem:[#allocation7 + $0x20] sm:$0xff] }
  0x5b   :  { %v1671_v5 = vpack.c.bf16 %v117_v4, %v116_v2  ;;  %v119_v7 = vld [vmem:[#allocation7 + $0x28] sm:$0xff]  ;;  %v130_v9 = vld [vmem:[#allocation2] sm:$0xff]  ;;  %v120_v10 = vld [vmem:[#allocation7 + $0x30] sm:$0xff] }
  0x5c   :  { %1668 = vmatprep.subr.bf16.mxu0 %v1667_v3  ;;  %v1675_v8 = vpack.c.bf16 %v119_v7, %v118_v6  ;;  %v121_v11 = vld [vmem:[#allocation7 + $0x38] sm:$0xff]  ;;  %1363 = vmatprep.mubr.f32.mxu0 %v130_v9  ;;  %v122_v13 = vld [vmem:[#allocation7 + $0x40] sm:$0xff]  ;;  %v123_v14 = vld [vmem:[#allocation7 + $0x48] sm:$0xff] }
  0x5d   :  { %1670 = vmatpush3.bf16.msra.mxu0 %v1667_v3  ;;  %v1679_v12 = vpack.c.bf16 %v121_v11, %v120_v10  ;;  %v1683_v15 = vpack.c.bf16 %v123_v14, %v122_v13  ;;  %v124_v16 = vld [vmem:[#allocation7 + $0x50] sm:$0xff]  ;;  %v125_v17 = vld [vmem:[#allocation7 + $0x58] sm:$0xff]  ;;  %v126_v19 = vld [vmem:[#allocation7 + $0x60] sm:$0xff] }
  0x5e   :  { %1672 = vmatprep.subr.bf16.mxu0 %v1671_v5  ;;  %v1687_v18 = vpack.c.bf16 %v125_v17, %v124_v16  ;;  %v127_v20 = vld [vmem:[#allocation7 + $0x68] sm:$0xff]  ;;  %v128_v22 = vld [vmem:[#allocation7 + $0x70] sm:$0xff]  ;;  %v129_v23 = vld [vmem:[#allocation7 + $0x78] sm:$0xff] }
  0x5f   :  { %v1691_v21 = vpack.c.bf16 %v127_v20, %v126_v19  ;;  %v1695_v24 = vpack.c.bf16 %v129_v23, %v128_v22  ;;  %v131_v25 = vld [vmem:[#allocation2 + $0x8] sm:$0xff]  ;;  %v132_v26 = vld [vmem:[#allocation2 + $0x10] sm:$0xff]  ;;  %v133_v27 = vld [vmem:[#allocation2 + $0x18] sm:$0xff] }
  0x60   :  { %v134_v28 = vld [vmem:[#allocation2 + $0x20] sm:$0xff]  ;;  %v135_v29 = vld [vmem:[#allocation2 + $0x28] sm:$0xff]  ;;  %v136_v30 = vld [vmem:[#allocation2 + $0x30] sm:$0xff] }
  0x61   :  { %1674 = vmatpush3.bf16.msra.mxu0 %v1671_v5  ;;  %v137_v31 = vld [vmem:[#allocation2 + $0x38] sm:$0xff]  ;;  %v138_v32 = vld [vmem:[#allocation2 + $0x40] sm:$0xff]  ;;  %v139_v33 = vld [vmem:[#allocation2 + $0x48] sm:$0xff] }
  0x62   :  { %1676 = vmatprep.subr.bf16.mxu0 %v1675_v8  ;;  %v140_v34 = vld [vmem:[#allocation2 + $0x50] sm:$0xff]  ;;  %v141_v35 = vld [vmem:[#allocation2 + $0x58] sm:$0xff]  ;;  %v142_v36 = vld [vmem:[#allocation2 + $0x60] sm:$0xff] }
  0x63   :  { %v143_v37 = vld [vmem:[#allocation2 + $0x68] sm:$0xff]  ;;  %v144_v38 = vld [vmem:[#allocation2 + $0x70] sm:$0xff]  ;;  %v145_v39 = vld [vmem:[#allocation2 + $0x78] sm:$0xff] }
  0x64   :  { %v2149_v40 = vld [vmem:[#allocation5] sm:$0xff]  ;;  %v460_v42 = vld [vmem:[#allocation8 + $0x8] sm:$0xff]  ;;  %v461_v43 = vld [vmem:[#allocation8 + $0x10] sm:$0xff] }
  0x65   :  { %1678 = vmatpush3.bf16.msra.mxu0 %v1675_v8  ;;  %1419 = vmatprep.mubr.f32.mxu1 %v2149_v40  ;;  %v459_v41 = vld [vmem:[#allocation8] sm:$0xff]  ;;  %v462_v45 = vld [vmem:[#allocation8 + $0x18] sm:$0xff]  ;;  %v464_v48 = vld [vmem:[#allocation8 + $0x28] sm:$0xff] }
  0x66   :  { %1680 = vmatprep.subr.bf16.mxu0 %v1679_v12  ;;  %v1731_v44 = vpack.c.bf16 %v460_v42, %v459_v41  ;;  %v1735_v46 = vpack.c.bf16 %v462_v45, %v461_v43  ;;  %v463_v47 = vld [vmem:[#allocation8 + $0x20] sm:$0xff]  ;;  %v465_v50 = vld [vmem:[#allocation8 + $0x30] sm:$0xff]  ;;  %v466_v51 = vld [vmem:[#allocation8 + $0x38] sm:$0xff] }
  0x67   :  { %v1739_v49 = vpack.c.bf16 %v464_v48, %v463_v47  ;;  %v1743_v52 = vpack.c.bf16 %v466_v51, %v465_v50  ;;  %v467_v53 = vld [vmem:[#allocation8 + $0x40] sm:$0xff]  ;;  %v468_v54 = vld [vmem:[#allocation8 + $0x48] sm:$0xff]  ;;  %v469_v56 = vld [vmem:[#allocation8 + $0x50] sm:$0xff] }
  0x68   :  { %v1747_v55 = vpack.c.bf16 %v468_v54, %v467_v53  ;;  %v470_v57 = vld [vmem:[#allocation8 + $0x58] sm:$0xff]  ;;  %v471_v59 = vld [vmem:[#allocation8 + $0x60] sm:$0xff]  ;;  %v472_v60 = vld [vmem:[#allocation8 + $0x68] sm:$0xff] }
  0x69   :  { %1682 = vmatpush3.bf16.msra.mxu0 %v1679_v12  ;;  %v1751_v58 = vpack.c.bf16 %v470_v57, %v469_v56  ;;  %v1755_v61 = vpack.c.bf16 %v472_v60, %v471_v59  ;;  %v2152_v22 = vld [vmem:[#allocation5 + $0x8] sm:$0xff]  ;;  %v2154_v23 = vld [vmem:[#allocation5 + $0x10] sm:$0xff]  ;;  %v1136_v41 = vld [vmem:[%s2256_s3] ss:$0 sm:$0xff] }
  0x6a   :  { %1684 = vmatprep.subr.bf16.mxu0 %v1683_v15 }
  0x6d   :  { %1686 = vmatpush3.bf16.msra.mxu0 %v1683_v15 }
  0x6e   :  { %1688 = vmatprep.subr.bf16.mxu0 %v1687_v18 }
  0x71   :  { %1690 = vmatpush3.bf16.msra.mxu0 %v1687_v18 }
  0x72   :  { %1692 = vmatprep.subr.bf16.mxu0 %v1691_v21 }
  0x75   :  { %1694 = vmatpush3.bf16.msra.mxu0 %v1691_v21 }
  0x76   :  { %1696 = vmatprep.subr.bf16.mxu0 %v1695_v24 }
  0x79   :  { %1698 = vmatpush3.bf16.msra.mxu0 %v1695_v24  ;;  %v2158_v24 = vld [vmem:[#allocation5 + $0x18] sm:$0xff] }
  0x7a   :  { %1732 = vmatprep.subr.bf16.mxu0 %v1731_v44 }
  0x7c   :  { %1364 = vmatmul.mubr.f32.vlgmr.msra.gmra.mrb[0].mxu0 %v131_v25  ;;  %v2160_v25 = vld [vmem:[#allocation5 + $0x20] sm:$0xff] }
  0x7d   :  { %1366 = vmatprep.mubr.f32.mxu0 %v132_v26  ;;  %1734 = vmatpush3.bf16.msra.mxu0 %v1731_v44  ;;  %v2164_v26 = vld [vmem:[#allocation5 + $0x28] sm:$0xff] }
  0x7e   :  { %1736 = vmatprep.subr.bf16.mxu0 %v1735_v46 }
  0x80   :  { %1367 = vmatmul.mubr.f32.gmra.mrb[2].mxu0 %v133_v27  ;;  %v2166_v27 = vld [vmem:[#allocation5 + $0x30] sm:$0xff] }
  0x81   :  { %1369 = vmatprep.mubr.f32.mxu0 %v134_v28  ;;  %1738 = vmatpush3.bf16.msra.mxu0 %v1735_v46  ;;  %v2170_v28 = vld [vmem:[#allocation5 + $0x38] sm:$0xff] }
  0x82   :  { %1740 = vmatprep.subr.bf16.mxu0 %v1739_v49 }
  0x84   :  { %1370 = vmatmul.mubr.f32.gmra.mrb[4].mxu0 %v135_v29  ;;  %v2172_v29 = vld [vmem:[#allocation5 + $0x40] sm:$0xff] }
  0x85   :  { %1372 = vmatprep.mubr.f32.mxu0 %v136_v30  ;;  %1742 = vmatpush3.bf16.msra.mxu0 %v1739_v49  ;;  %v2176_v30 = vld [vmem:[#allocation5 + $0x48] sm:$0xff] }
  0x86   :  { %1744 = vmatprep.subr.bf16.mxu0 %v1743_v52 }
  0x88   :  { %1373 = vmatmul.mubr.f32.gmra.mrb[6].mxu0 %v137_v31  ;;  %v2178_v31 = vld [vmem:[#allocation5 + $0x50] sm:$0xff] }
  0x89   :  { %1375 = vmatprep.mubr.f32.mxu0 %v138_v32  ;;  %1746 = vmatpush3.bf16.msra.mxu0 %v1743_v52  ;;  %v2182_v32 = vld [vmem:[#allocation5 + $0x58] sm:$0xff] }
  0x8a   :  { %1748 = vmatprep.subr.bf16.mxu0 %v1747_v55 }
  0x8c   :  { %1376 = vmatmul.mubr.f32.gmra.mrb[8].mxu0 %v139_v33  ;;  %v2184_v33 = vld [vmem:[#allocation5 + $0x60] sm:$0xff] }
  0x8d   :  { %1378 = vmatprep.mubr.f32.mxu0 %v140_v34  ;;  %1750 = vmatpush3.bf16.msra.mxu0 %v1747_v55  ;;  %v2188_v34 = vld [vmem:[#allocation5 + $0x68] sm:$0xff] }
  0x8e   :  { %1752 = vmatprep.subr.bf16.mxu0 %v1751_v58 }
  0x90   :  { %1379 = vmatmul.mubr.f32.gmra.mrb[10].mxu0 %v141_v35  ;;  %v2190_v35 = vld [vmem:[#allocation5 + $0x70] sm:$0xff] }
  0x91   :  { %1381 = vmatprep.mubr.f32.mxu0 %v142_v36  ;;  %1754 = vmatpush3.bf16.msra.mxu0 %v1751_v58  ;;  %v2194_v36 = vld [vmem:[#allocation5 + $0x78] sm:$0xff] }
  0x92   :  { %1756 = vmatprep.subr.bf16.mxu0 %v1755_v61 }
  0x94   :  { %1382 = vmatmul.mubr.f32.gmra.mrb[12].mxu0 %v143_v37  ;;  %v473_v37 = vld [vmem:[#allocation8 + $0x70] sm:$0xff] }
  0x95   :  { %1384 = vmatprep.mubr.f32.mxu0 %v144_v38  ;;  %1758 = vmatpush3.bf16.msra.mxu0 %v1755_v61  ;;  %v474_v38 = vld [vmem:[#allocation8 + $0x78] sm:$0xff] }
  0x98   :  { %1385 = vmatmul.mubr.f32.gmra.mrb[14].mxu0 %v145_v39  ;;  %v1759_v39 = vpack.c.bf16 %v474_v38, %v473_v37 }
  0x9a   :  { %1760 = vmatprep.subr.bf16.mxu0 %v1759_v39 }
  0x9b   :  { %1762 = vmatpush3.bf16.msra.mxu0 %v1759_v39 }
 0x14f   :  { %v1365_v62 = vpop.f32.mrb[0].mxu0 }
 0x150   :  { %v212_v63 = vpop.f32.mrb[1].mxu0 }
 0x151   :  { %v1699_v0 = vpack.c.bf16 %v1365_v62, %v212_v63 }
 0x153   :  { %v1368_v1 = vpop.f32.mrb[2].mxu0  ;;  %1700 = vmatprep.subr.bf16.mxu1 %v1699_v0 }
 0x154   :  { %v222_v2 = vpop.f32.mrb[3].mxu0  ;;  %1702 = vmatpush3.bf16.msra.mxu1 %v1699_v0 }
 0x155   :  { %v1703_v3 = vpack.c.bf16 %v1368_v1, %v222_v2 }
 0x157   :  { %v1371_v4 = vpop.f32.mrb[4].mxu0  ;;  %1704 = vmatprep.subr.bf16.mxu1 %v1703_v3 }
 0x158   :  { %v232_v5 = vpop.f32.mrb[5].mxu0  ;;  %1706 = vmatpush3.bf16.msra.mxu1 %v1703_v3 }
 0x159   :  { %v1707_v6 = vpack.c.bf16 %v1371_v4, %v232_v5 }
 0x15b   :  { %v1374_v7 = vpop.f32.mrb[6].mxu0  ;;  %1708 = vmatprep.subr.bf16.mxu1 %v1707_v6 }
 0x15c   :  { %v242_v8 = vpop.f32.mrb[7].mxu0  ;;  %1710 = vmatpush3.bf16.msra.mxu1 %v1707_v6 }
 0x15d   :  { %v1711_v9 = vpack.c.bf16 %v1374_v7, %v242_v8 }
 0x15f   :  { %v1377_v10 = vpop.f32.mrb[8].mxu0  ;;  %1712 = vmatprep.subr.bf16.mxu1 %v1711_v9 }
 0x160   :  { %v252_v11 = vpop.f32.mrb[9].mxu0  ;;  %1714 = vmatpush3.bf16.msra.mxu1 %v1711_v9 }
 0x161   :  { %v1715_v12 = vpack.c.bf16 %v1377_v10, %v252_v11 }
 0x163   :  { %v1380_v13 = vpop.f32.mrb[10].mxu0  ;;  %1716 = vmatprep.subr.bf16.mxu1 %v1715_v12 }
 0x164   :  { %v262_v14 = vpop.f32.mrb[11].mxu0  ;;  %1718 = vmatpush3.bf16.msra.mxu1 %v1715_v12 }
 0x165   :  { %v1719_v15 = vpack.c.bf16 %v1380_v13, %v262_v14 }
 0x167   :  { %v1383_v16 = vpop.f32.mrb[12].mxu0  ;;  %1720 = vmatprep.subr.bf16.mxu1 %v1719_v15 }
 0x168   :  { %v272_v17 = vpop.f32.mrb[13].mxu0  ;;  %1722 = vmatpush3.bf16.msra.mxu1 %v1719_v15 }
 0x169   :  { %v1723_v18 = vpack.c.bf16 %v1383_v16, %v272_v17 }
 0x16b   :  { %v1386_v19 = vpop.f32.mrb[14].mxu0  ;;  %1724 = vmatprep.subr.bf16.mxu1 %v1723_v18 }
 0x16c   :  { %v282_v20 = vpop.f32.mrb[15].mxu0  ;;  %1726 = vmatpush3.bf16.msra.mxu1 %v1723_v18 }
 0x16d   :  { %v1727_v21 = vpack.c.bf16 %v1386_v19, %v282_v20 }
 0x16f   :  { %1728 = vmatprep.subr.bf16.mxu1 %v1727_v21 }
 0x170   :  { %1730 = vmatpush3.bf16.msra.mxu1 %v1727_v21 }
 0x173   :  { %1420 = vmatmul.mubr.f32.vlgmr.msra.gmra.mrb[0].mxu1 %v2152_v22 }
 0x174   :  { %1422 = vmatprep.mubr.f32.mxu1 %v2154_v23 }
 0x177   :  { %1423 = vmatmul.mubr.f32.gmra.mrb[2].mxu1 %v2158_v24 }
 0x178   :  { %1425 = vmatprep.mubr.f32.mxu1 %v2160_v25 }
 0x17b   :  { %1426 = vmatmul.mubr.f32.gmra.mrb[4].mxu1 %v2164_v26 }
 0x17c   :  { %1428 = vmatprep.mubr.f32.mxu1 %v2166_v27 }
 0x17f   :  { %1429 = vmatmul.mubr.f32.gmra.mrb[6].mxu1 %v2170_v28 }
 0x180   :  { %1431 = vmatprep.mubr.f32.mxu1 %v2172_v29 }
 0x183   :  { %1432 = vmatmul.mubr.f32.gmra.mrb[8].mxu1 %v2176_v30 }
 0x184   :  { %1434 = vmatprep.mubr.f32.mxu1 %v2178_v31 }
 0x187   :  { %1435 = vmatmul.mubr.f32.gmra.mrb[10].mxu1 %v2182_v32 }
 0x188   :  { %1437 = vmatprep.mubr.f32.mxu1 %v2184_v33 }
 0x18b   :  { %1438 = vmatmul.mubr.f32.gmra.mrb[12].mxu1 %v2188_v34 }
 0x18c   :  { %1440 = vmatprep.mubr.f32.mxu1 %v2190_v35 }
 0x18f   :  { %1441 = vmatmul.mubr.f32.gmra.mrb[14].mxu1 %v2194_v36 }
 0x190   :  { %1531 = vmatprep.mubr.f32.mxu1 %v2149_v40 }
 0x246   :  { %v1421_v42 = vpop.f32.mrb[0].mxu1 }
 0x247   :  { %v370_v43 = vadd.f32 %v1421_v42, %v1136_v41  ;;  %v364_v44 = vpop.f32.mrb[1].mxu1 }
 0x248   :  { %v365_v45 = vadd.f32 %v1136_v41, %v364_v44  ;;  %v789_v44 = vld [vmem:[#allocation10 + $0x8] sm:$0xff] }
 0x249   :  { %v444_v48 = vmax.f32 %v370_v43, 0.0  ;;  %v788_v43 = vld [vmem:[#allocation10] sm:$0xff] }
 0x24a   :  { %v443_v46 = vmax.f32 %v365_v45, 0.0  ;;  %v1424_v47 = vpop.f32.mrb[2].mxu1  ;;  %v790_v45 = vld [vmem:[#allocation10 + $0x10] sm:$0xff] }
 0x24b   :  { %v380_v49 = vadd.f32 %v1424_v47, %v1136_v41  ;;  %v374_v50 = vpop.f32.mrb[3].mxu1  ;;  %v791_v47 = vld [vmem:[#allocation10 + $0x18] sm:$0xff] }
 0x24c   :  { %v375_v51 = vadd.f32 %v1136_v41, %v374_v50  ;;  %1475 = vmatprep.mubr.f32.mxu0 %v443_v46  ;;  %v1795_v46 = vpack.c.bf16 %v789_v44, %v788_v43  ;;  %v793_v50 = vld [vmem:[#allocation10 + $0x28] sm:$0xff]  ;;  %v1137_v43 = vld [vmem:[%s2258_s5] ss:$0 sm:$0xff] }
 0x24d   :  { %1476 = vmatmul.mubr.f32.vlgmr.msra.gmra.mrb[16].mxu0 %v444_v48  ;;  %v446_v54 = vmax.f32 %v380_v49, 0.0  ;;  %v1799_v48 = vpack.c.bf16 %v791_v47, %v790_v45  ;;  %v792_v49 = vld [vmem:[#allocation10 + $0x20] sm:$0xff] }
 0x24e   :  { %v445_v52 = vmax.f32 %v375_v51, 0.0  ;;  %v1427_v53 = vpop.f32.mrb[4].mxu1  ;;  %1796 = vmatprep.subr.bf16.mxu0 %v1795_v46  ;;  %v1803_v51 = vpack.c.bf16 %v793_v50, %v792_v49 }
 0x24f   :  { %v390_v55 = vadd.f32 %v1427_v53, %v1136_v41  ;;  %v384_v56 = vpop.f32.mrb[5].mxu1  ;;  %1798 = vmatpush3.bf16.msra.mxu0 %v1795_v46 }
 0x250   :  { %v385_v57 = vadd.f32 %v1136_v41, %v384_v56  ;;  %1478 = vmatprep.mubr.f32.mxu0 %v445_v52  ;;  %1800 = vmatprep.subr.bf16.mxu0 %v1799_v48  ;;  %v794_v52 = vld [vmem:[#allocation10 + $0x30] sm:$0xff] }
 0x251   :  { %1479 = vmatmul.mubr.f32.gmra.mrb[18].mxu0 %v446_v54  ;;  %v448_v60 = vmax.f32 %v390_v55, 0.0  ;;  %v796_v54 = vld [vmem:[#allocation10 + $0x40] sm:$0xff]  ;;  %v797_v55 = vld [vmem:[#allocation10 + $0x48] sm:$0xff] }
 0x252   :  { %v447_v58 = vmax.f32 %v385_v57, 0.0  ;;  %v1430_v59 = vpop.f32.mrb[6].mxu1  ;;  %v1811_v56 = vpack.c.bf16 %v797_v55, %v796_v54  ;;  %v798_v57 = vld [vmem:[#allocation10 + $0x50] sm:$0xff] }
 0x253   :  { %v400_v61 = vadd.f32 %v1430_v59, %v1136_v41  ;;  %v394_v62 = vpop.f32.mrb[7].mxu1  ;;  %1802 = vmatpush3.bf16.msra.mxu0 %v1799_v48 }
 0x254   :  { %v395_v63 = vadd.f32 %v1136_v41, %v394_v62  ;;  %1481 = vmatprep.mubr.f32.mxu0 %v447_v58  ;;  %1804 = vmatprep.subr.bf16.mxu0 %v1803_v51  ;;  %v799_v58 = vld [vmem:[#allocation10 + $0x58] sm:$0xff] }
 0x255   :  { %1482 = vmatmul.mubr.f32.gmra.mrb[20].mxu0 %v448_v60  ;;  %v450_v2 = vmax.f32 %v400_v61, 0.0  ;;  %v1815_v59 = vpack.c.bf16 %v799_v58, %v798_v57  ;;  %v800_v60 = vld [vmem:[#allocation10 + $0x60] sm:$0xff]  ;;  %v801_v61 = vld [vmem:[#allocation10 + $0x68] sm:$0xff] }
 0x256   :  { %v449_v0 = vmax.f32 %v395_v63, 0.0  ;;  %v1433_v1 = vpop.f32.mrb[8].mxu1  ;;  %v1819_v62 = vpack.c.bf16 %v801_v61, %v800_v60 }
 0x257   :  { %v410_v3 = vadd.f32 %v1433_v1, %v1136_v41  ;;  %v404_v4 = vpop.f32.mrb[9].mxu1  ;;  %1806 = vmatpush3.bf16.msra.mxu0 %v1803_v51 }
 0x258   :  { %v405_v5 = vadd.f32 %v1136_v41, %v404_v4  ;;  %1484 = vmatprep.mubr.f32.mxu0 %v449_v0 }
 0x259   :  { %1485 = vmatmul.mubr.f32.gmra.mrb[22].mxu0 %v450_v2  ;;  %v452_v8 = vmax.f32 %v410_v3, 0.0 }
 0x25a   :  { %v451_v6 = vmax.f32 %v405_v5, 0.0  ;;  %v1436_v7 = vpop.f32.mrb[10].mxu1 }
 0x25b   :  { %v420_v9 = vadd.f32 %v1436_v7, %v1136_v41  ;;  %v414_v10 = vpop.f32.mrb[11].mxu1 }
 0x25c   :  { %v415_v11 = vadd.f32 %v1136_v41, %v414_v10  ;;  %1487 = vmatprep.mubr.f32.mxu0 %v451_v6 }
 0x25d   :  { %1488 = vmatmul.mubr.f32.gmra.mrb[24].mxu0 %v452_v8  ;;  %v454_v14 = vmax.f32 %v420_v9, 0.0 }
 0x25e   :  { %v453_v12 = vmax.f32 %v415_v11, 0.0  ;;  %v1439_v13 = vpop.f32.mrb[12].mxu1 }
 0x25f   :  { %v430_v15 = vadd.f32 %v1439_v13, %v1136_v41  ;;  %v424_v16 = vpop.f32.mrb[13].mxu1 }
 0x260   :  { %v425_v17 = vadd.f32 %v1136_v41, %v424_v16  ;;  %1490 = vmatprep.mubr.f32.mxu0 %v453_v12 }
 0x261   :  { %1491 = vmatmul.mubr.f32.gmra.mrb[26].mxu0 %v454_v14  ;;  %v456_v20 = vmax.f32 %v430_v15, 0.0 }
 0x262   :  { %v455_v18 = vmax.f32 %v425_v17, 0.0  ;;  %v1442_v19 = vpop.f32.mrb[14].mxu1 }
 0x263   :  { %v440_v21 = vadd.f32 %v1442_v19, %v1136_v41  ;;  %v434_v37 = vpop.f32.mrb[15].mxu1 }
 0x264   :  { %v435_v38 = vadd.f32 %v1136_v41, %v434_v37  ;;  %1493 = vmatprep.mubr.f32.mxu0 %v455_v18  ;;  %v795_v41 = vld [vmem:[#allocation10 + $0x38] sm:$0xff] }
 0x265   :  { %1494 = vmatmul.mubr.f32.gmra.mrb[28].mxu0 %v456_v20  ;;  %v458_v42 = vmax.f32 %v440_v21, 0.0  ;;  %v1807_v53 = vpack.c.bf16 %v795_v41, %v794_v52 }
 0x266   :  { %v457_v39 = vmax.f32 %v435_v38, 0.0  ;;  %v802_v38 = vld [vmem:[#allocation10 + $0x70] sm:$0xff] }
 0x267   :  { %1808 = vmatprep.subr.bf16.mxu0 %v1807_v53 }
 0x268   :  { %1496 = vmatprep.mubr.f32.mxu0 %v457_v39  ;;  %1810 = vmatpush3.bf16.msra.mxu0 %v1807_v53  ;;  %v803_v39 = vld [vmem:[#allocation10 + $0x78] sm:$0xff] }
 0x269   :  { %1497 = vmatmul.mubr.f32.gmra.mrb[30].mxu0 %v458_v42  ;;  %1812 = vmatprep.subr.bf16.mxu0 %v1811_v56  ;;  %v1823_v42 = vpack.c.bf16 %v803_v39, %v802_v38 }
 0x26c   :  { %1814 = vmatpush3.bf16.msra.mxu0 %v1811_v56 }
 0x26d   :  { %1816 = vmatprep.subr.bf16.mxu0 %v1815_v59 }
 0x270   :  { %1818 = vmatpush3.bf16.msra.mxu0 %v1815_v59 }
 0x271   :  { %1820 = vmatprep.subr.bf16.mxu0 %v1819_v62 }
 0x274   :  { %1822 = vmatpush3.bf16.msra.mxu0 %v1819_v62 }
 0x275   :  { %1824 = vmatprep.subr.bf16.mxu0 %v1823_v42 }
 0x278   :  { %1826 = vmatpush3.bf16.msra.mxu0 %v1823_v42 }
 0x320   :  { %v1477_v63 = vpop.f32.mrb[16].mxu0 }
 0x321   :  { %v541_v0 = vpop.f32.mrb[17].mxu0 }
 0x322   :  { %v1763_v1 = vpack.c.bf16 %v1477_v63, %v541_v0 }
 0x324   :  { %v1480_v2 = vpop.f32.mrb[18].mxu0  ;;  %1764 = vmatprep.subr.bf16.mxu1 %v1763_v1 }
 0x325   :  { %v551_v3 = vpop.f32.mrb[19].mxu0  ;;  %1766 = vmatpush3.bf16.msra.mxu1 %v1763_v1 }
 0x326   :  { %v1767_v4 = vpack.c.bf16 %v1480_v2, %v551_v3 }
 0x328   :  { %v1483_v5 = vpop.f32.mrb[20].mxu0  ;;  %1768 = vmatprep.subr.bf16.mxu1 %v1767_v4 }
 0x329   :  { %v561_v6 = vpop.f32.mrb[21].mxu0  ;;  %1770 = vmatpush3.bf16.msra.mxu1 %v1767_v4 }
 0x32a   :  { %v1771_v7 = vpack.c.bf16 %v1483_v5, %v561_v6 }
 0x32c   :  { %v1486_v8 = vpop.f32.mrb[22].mxu0  ;;  %1772 = vmatprep.subr.bf16.mxu1 %v1771_v7 }
 0x32d   :  { %v571_v9 = vpop.f32.mrb[23].mxu0  ;;  %1774 = vmatpush3.bf16.msra.mxu1 %v1771_v7 }
 0x32e   :  { %v1775_v10 = vpack.c.bf16 %v1486_v8, %v571_v9 }
 0x330   :  { %v1489_v11 = vpop.f32.mrb[24].mxu0  ;;  %1776 = vmatprep.subr.bf16.mxu1 %v1775_v10 }
 0x331   :  { %v581_v12 = vpop.f32.mrb[25].mxu0  ;;  %1778 = vmatpush3.bf16.msra.mxu1 %v1775_v10 }
 0x332   :  { %v1779_v13 = vpack.c.bf16 %v1489_v11, %v581_v12 }
 0x334   :  { %v1492_v14 = vpop.f32.mrb[26].mxu0  ;;  %1780 = vmatprep.subr.bf16.mxu1 %v1779_v13 }
 0x335   :  { %v591_v15 = vpop.f32.mrb[27].mxu0  ;;  %1782 = vmatpush3.bf16.msra.mxu1 %v1779_v13 }
 0x336   :  { %v1783_v16 = vpack.c.bf16 %v1492_v14, %v591_v15 }
 0x338   :  { %v1495_v17 = vpop.f32.mrb[28].mxu0  ;;  %1784 = vmatprep.subr.bf16.mxu1 %v1783_v16 }
 0x339   :  { %v601_v18 = vpop.f32.mrb[29].mxu0  ;;  %1786 = vmatpush3.bf16.msra.mxu1 %v1783_v16 }
 0x33a   :  { %v1787_v19 = vpack.c.bf16 %v1495_v17, %v601_v18 }
 0x33c   :  { %v1498_v20 = vpop.f32.mrb[30].mxu0  ;;  %1788 = vmatprep.subr.bf16.mxu1 %v1787_v19 }
 0x33d   :  { %v611_v21 = vpop.f32.mrb[31].mxu0  ;;  %1790 = vmatpush3.bf16.msra.mxu1 %v1787_v19 }
 0x33e   :  { %v1791_v37 = vpack.c.bf16 %v1498_v20, %v611_v21 }
 0x340   :  { %1792 = vmatprep.subr.bf16.mxu1 %v1791_v37 }
 0x341   :  { %1794 = vmatpush3.bf16.msra.mxu1 %v1791_v37 }
 0x344   :  { %1532 = vmatmul.mubr.f32.vlgmr.msra.gmra.mrb[16].mxu1 %v2152_v22 }
 0x345   :  { %1534 = vmatprep.mubr.f32.mxu1 %v2154_v23 }
 0x348   :  { %1535 = vmatmul.mubr.f32.gmra.mrb[18].mxu1 %v2158_v24 }
 0x349   :  { %1537 = vmatprep.mubr.f32.mxu1 %v2160_v25 }
 0x34c   :  { %1538 = vmatmul.mubr.f32.gmra.mrb[20].mxu1 %v2164_v26 }
 0x34d   :  { %1540 = vmatprep.mubr.f32.mxu1 %v2166_v27 }
 0x350   :  { %1541 = vmatmul.mubr.f32.gmra.mrb[22].mxu1 %v2170_v28 }
 0x351   :  { %1543 = vmatprep.mubr.f32.mxu1 %v2172_v29 }
 0x354   :  { %1544 = vmatmul.mubr.f32.gmra.mrb[24].mxu1 %v2176_v30 }
 0x355   :  { %1546 = vmatprep.mubr.f32.mxu1 %v2178_v31 }
 0x358   :  { %1547 = vmatmul.mubr.f32.gmra.mrb[26].mxu1 %v2182_v32 }
 0x359   :  { %1549 = vmatprep.mubr.f32.mxu1 %v2184_v33 }
 0x35c   :  { %1550 = vmatmul.mubr.f32.gmra.mrb[28].mxu1 %v2188_v34 }
 0x35d   :  { %1552 = vmatprep.mubr.f32.mxu1 %v2190_v35 }
 0x360   :  { %1553 = vmatmul.mubr.f32.gmra.mrb[30].mxu1 %v2194_v36 }
 0x361   :  { %1643 = vmatprep.mubr.f32.mxu1 %v2149_v40 }
 0x417   :  { %v1533_v44 = vpop.f32.mrb[16].mxu1 }
 0x418   :  { %v699_v45 = vadd.f32 %v1533_v44, %v1137_v43  ;;  %v693_v46 = vpop.f32.mrb[17].mxu1 }
 0x419   :  { %v694_v47 = vadd.f32 %v1137_v43, %v693_v46 }
 0x41a   :  { %v773_v50 = vmax.f32 %v699_v45, 0.0 }
 0x41b   :  { %v772_v48 = vmax.f32 %v694_v47, 0.0  ;;  %v1536_v49 = vpop.f32.mrb[18].mxu1 }
 0x41c   :  { %v709_v51 = vadd.f32 %v1536_v49, %v1137_v43  ;;  %v703_v52 = vpop.f32.mrb[19].mxu1 }
 0x41d   :  { %v704_v41 = vadd.f32 %v1137_v43, %v703_v52  ;;  %1587 = vmatprep.mubr.f32.mxu0 %v772_v48 }
 0x41e   :  { %1588 = vmatmul.mubr.f32.vlgmr.msra.gmra.mrb[32].mxu0 %v773_v50  ;;  %v775_v54 = vmax.f32 %v709_v51, 0.0 }
 0x41f   :  { %v774_v40 = vmax.f32 %v704_v41, 0.0  ;;  %v1539_v53 = vpop.f32.mrb[20].mxu1 }
 0x420   :  { %v719_v55 = vadd.f32 %v1539_v53, %v1137_v43  ;;  %v713_v56 = vpop.f32.mrb[21].mxu1 }
 0x421   :  { %v714_v57 = vadd.f32 %v1137_v43, %v713_v56  ;;  %1590 = vmatprep.mubr.f32.mxu0 %v774_v40 }
 0x422   :  { %1591 = vmatmul.mubr.f32.gmra.mrb[34].mxu0 %v775_v54  ;;  %v777_v60 = vmax.f32 %v719_v55, 0.0 }
 0x423   :  { %v776_v58 = vmax.f32 %v714_v57, 0.0  ;;  %v1542_v59 = vpop.f32.mrb[22].mxu1 }
 0x424   :  { %v729_v61 = vadd.f32 %v1542_v59, %v1137_v43  ;;  %v723_v62 = vpop.f32.mrb[23].mxu1 }
 0x425   :  { %v724_v63 = vadd.f32 %v1137_v43, %v723_v62  ;;  %1593 = vmatprep.mubr.f32.mxu0 %v776_v58 }
 0x426   :  { %1594 = vmatmul.mubr.f32.gmra.mrb[36].mxu0 %v777_v60  ;;  %v779_v2 = vmax.f32 %v729_v61, 0.0 }
 0x427   :  { %v778_v0 = vmax.f32 %v724_v63, 0.0  ;;  %v1545_v1 = vpop.f32.mrb[24].mxu1 }
 0x428   :  { %v739_v3 = vadd.f32 %v1545_v1, %v1137_v43  ;;  %v733_v4 = vpop.f32.mrb[25].mxu1 }
 0x429   :  { %v734_v5 = vadd.f32 %v1137_v43, %v733_v4  ;;  %1596 = vmatprep.mubr.f32.mxu0 %v778_v0 }
 0x42a   :  { %1597 = vmatmul.mubr.f32.gmra.mrb[38].mxu0 %v779_v2  ;;  %v781_v8 = vmax.f32 %v739_v3, 0.0 }
 0x42b   :  { %v780_v6 = vmax.f32 %v734_v5, 0.0  ;;  %v1548_v7 = vpop.f32.mrb[26].mxu1 }
 0x42c   :  { %v749_v9 = vadd.f32 %v1548_v7, %v1137_v43  ;;  %v743_v10 = vpop.f32.mrb[27].mxu1 }
 0x42d   :  { %v744_v11 = vadd.f32 %v1137_v43, %v743_v10  ;;  %1599 = vmatprep.mubr.f32.mxu0 %v780_v6 }
 0x42e   :  { %1600 = vmatmul.mubr.f32.gmra.mrb[40].mxu0 %v781_v8  ;;  %v783_v14 = vmax.f32 %v749_v9, 0.0 }
 0x42f   :  { %v782_v12 = vmax.f32 %v744_v11, 0.0  ;;  %v1551_v13 = vpop.f32.mrb[28].mxu1 }
 0x430   :  { %v759_v15 = vadd.f32 %v1551_v13, %v1137_v43  ;;  %v753_v16 = vpop.f32.mrb[29].mxu1 }
 0x431   :  { %v754_v17 = vadd.f32 %v1137_v43, %v753_v16  ;;  %1602 = vmatprep.mubr.f32.mxu0 %v782_v12 }
 0x432   :  { %1603 = vmatmul.mubr.f32.gmra.mrb[42].mxu0 %v783_v14  ;;  %v785_v20 = vmax.f32 %v759_v15, 0.0 }
 0x433   :  { %v784_v18 = vmax.f32 %v754_v17, 0.0  ;;  %v1554_v19 = vpop.f32.mrb[30].mxu1 }
 0x434   :  { %v769_v21 = vadd.f32 %v1554_v19, %v1137_v43  ;;  %v763_v37 = vpop.f32.mrb[31].mxu1 }
 0x435   :  { %v764_v38 = vadd.f32 %v1137_v43, %v763_v37  ;;  %1605 = vmatprep.mubr.f32.mxu0 %v784_v18 }
 0x436   :  { %1606 = vmatmul.mubr.f32.gmra.mrb[44].mxu0 %v785_v20  ;;  %v787_v42 = vmax.f32 %v769_v21, 0.0 }
 0x437   :  { %v786_v39 = vmax.f32 %v764_v38, 0.0 }
 0x439   :  { %1608 = vmatprep.mubr.f32.mxu0 %v786_v39 }
 0x43a   :  { %1609 = vmatmul.mubr.f32.gmra.mrb[46].mxu0 %v787_v42 }
 0x4f1   :  { %v1589_v44 = vpop.f32.mrb[32].mxu0 }
 0x4f2   :  { %v870_v45 = vpop.f32.mrb[33].mxu0 }
 0x4f3   :  { %v1827_v46 = vpack.c.bf16 %v1589_v44, %v870_v45 }
 0x4f5   :  { %v1592_v47 = vpop.f32.mrb[34].mxu0  ;;  %1828 = vmatprep.subr.bf16.mxu1 %v1827_v46 }
 0x4f6   :  { %v880_v48 = vpop.f32.mrb[35].mxu0  ;;  %1830 = vmatpush3.bf16.msra.mxu1 %v1827_v46 }
 0x4f7   :  { %v1831_v49 = vpack.c.bf16 %v1592_v47, %v880_v48 }
 0x4f9   :  { %v1595_v50 = vpop.f32.mrb[36].mxu0  ;;  %1832 = vmatprep.subr.bf16.mxu1 %v1831_v49 }
 0x4fa   :  { %v890_v51 = vpop.f32.mrb[37].mxu0  ;;  %1834 = vmatpush3.bf16.msra.mxu1 %v1831_v49 }
 0x4fb   :  { %v1835_v52 = vpack.c.bf16 %v1595_v50, %v890_v51 }
 0x4fd   :  { %v1598_v43 = vpop.f32.mrb[38].mxu0  ;;  %1836 = vmatprep.subr.bf16.mxu1 %v1835_v52 }
 0x4fe   :  { %v900_v41 = vpop.f32.mrb[39].mxu0  ;;  %1838 = vmatpush3.bf16.msra.mxu1 %v1835_v52 }
 0x4ff   :  { %v1839_v40 = vpack.c.bf16 %v1598_v43, %v900_v41 }
 0x501   :  { %v1601_v53 = vpop.f32.mrb[40].mxu0  ;;  %1840 = vmatprep.subr.bf16.mxu1 %v1839_v40 }
 0x502   :  { %v910_v54 = vpop.f32.mrb[41].mxu0  ;;  %1842 = vmatpush3.bf16.msra.mxu1 %v1839_v40 }
 0x503   :  { %v1843_v55 = vpack.c.bf16 %v1601_v53, %v910_v54 }
 0x505   :  { %v1604_v56 = vpop.f32.mrb[42].mxu0  ;;  %1844 = vmatprep.subr.bf16.mxu1 %v1843_v55 }
 0x506   :  { %v920_v57 = vpop.f32.mrb[43].mxu0  ;;  %1846 = vmatpush3.bf16.msra.mxu1 %v1843_v55 }
 0x507   :  { %v1847_v58 = vpack.c.bf16 %v1604_v56, %v920_v57 }
 0x509   :  { %v1607_v59 = vpop.f32.mrb[44].mxu0  ;;  %1848 = vmatprep.subr.bf16.mxu1 %v1847_v58 }
 0x50a   :  { %v930_v60 = vpop.f32.mrb[45].mxu0  ;;  %1850 = vmatpush3.bf16.msra.mxu1 %v1847_v58 }
 0x50b   :  { %v1851_v61 = vpack.c.bf16 %v1607_v59, %v930_v60 }
 0x50d   :  { %v1610_v62 = vpop.f32.mrb[46].mxu0  ;;  %1852 = vmatprep.subr.bf16.mxu1 %v1851_v61 }
 0x50e   :  { %v940_v63 = vpop.f32.mrb[47].mxu0  ;;  %1854 = vmatpush3.bf16.msra.mxu1 %v1851_v61 }
 0x50f   :  { %v1855_v0 = vpack.c.bf16 %v1610_v62, %v940_v63 }
 0x511   :  { %1856 = vmatprep.subr.bf16.mxu1 %v1855_v0 }
 0x512   :  { %1858 = vmatpush3.bf16.msra.mxu1 %v1855_v0 }
 0x515   :  { %1644 = vmatmul.mubr.f32.vlgmr.msra.gmra.mrb[32].mxu1 %v2152_v22  ;;  %v1138_v22 = vld [vmem:[%s2260_s7] ss:$0 sm:$0xff]  ;;  %s2014_s7 = smov [#allocation11]  }
 0x516   :  { %1646 = vmatprep.mubr.f32.mxu1 %v2154_v23  ;;  %s1122_s24 = sshll.u32 %s2014_s7, 4  ;;  %s1123_s24 = int_to_ptr.vmem [resolvable:$true] %s1122_s24 }
 0x517   :  { %s1977_s25 = scalar_lea.vmem %s1123_s24, 2048  ;;  %p1982_p13 = scmp.lt.s32.totalorder %s1123_s24, %s1123_s24 }
 0x518   :  { %p1978_p12 = scmp.ne.s32.totalorder %s1123_s24, %s1977_s25  ;;  %p1983_p0 = scmp.lt.s32.totalorder %s1977_s25, %s1977_s25 }
 0x519   :  { %1647 = vmatmul.mubr.f32.gmra.mrb[34].mxu1 %v2158_v24 }
 0x51a   :  { %1649 = vmatprep.mubr.f32.mxu1 %v2160_v25  ;;  %p1984_p1 = por %p1983_p0, %p1982_p13 }
 0x51c   :  { %p1985_p2 = pnand %p1984_p1, %p1978_p12 }
 0x51d   :  { %1650 = vmatmul.mubr.f32.gmra.mrb[36].mxu1 %v2164_v26 }
 0x51e   :  { %1652 = vmatprep.mubr.f32.mxu1 %v2166_v27 }
 0x521   :  { %1653 = vmatmul.mubr.f32.gmra.mrb[38].mxu1 %v2170_v28 }
 0x522   :  { %1655 = vmatprep.mubr.f32.mxu1 %v2172_v29 }
 0x525   :  { %1656 = vmatmul.mubr.f32.gmra.mrb[40].mxu1 %v2176_v30 }
 0x526   :  { %1658 = vmatprep.mubr.f32.mxu1 %v2178_v31 }
 0x529   :  { %1659 = vmatmul.mubr.f32.gmra.mrb[42].mxu1 %v2182_v32 }
 0x52a   :  { %1661 = vmatprep.mubr.f32.mxu1 %v2184_v33 }
 0x52d   :  { %1662 = vmatmul.mubr.f32.gmra.mrb[44].mxu1 %v2188_v34 }
 0x52e   :  { %1664 = vmatprep.mubr.f32.mxu1 %v2190_v35 }
 0x531   :  { %1665 = vmatmul.mubr.f32.gmra.mrb[46].mxu1 %v2194_v36 }
 0x5e8   :  { %v1645_v23 = vpop.f32.mrb[32].mxu1 }
 0x5e9   :  { %v1028_v24 = vadd.f32 %v1645_v23, %v1138_v22  ;;  %v1022_v25 = vpop.f32.mrb[33].mxu1 }
 0x5ea   :  { %v1023_v26 = vadd.f32 %v1138_v22, %v1022_v25 }
 0x5eb   :  { %1102 = vst [vmem:[#allocation11 + $0x8] sm:$0xff] %v1028_v24 }
 0x5ec   :  { %1101 = vst [vmem:[#allocation11] sm:$0xff] %v1023_v26  ;;  %v1648_v27 = vpop.f32.mrb[34].mxu1 }
 0x5ed   :  { %v1038_v28 = vadd.f32 %v1648_v27, %v1138_v22  ;;  %v1032_v29 = vpop.f32.mrb[35].mxu1 }
 0x5ee   :  { %v1033_v30 = vadd.f32 %v1138_v22, %v1032_v29 }
 0x5ef   :  { %1104 = vst [vmem:[#allocation11 + $0x18] sm:$0xff] %v1038_v28 }
 0x5f0   :  { %1103 = vst [vmem:[#allocation11 + $0x10] sm:$0xff] %v1033_v30  ;;  %v1651_v31 = vpop.f32.mrb[36].mxu1 }
 0x5f1   :  { %v1048_v32 = vadd.f32 %v1651_v31, %v1138_v22  ;;  %v1042_v33 = vpop.f32.mrb[37].mxu1 }
 0x5f2   :  { %v1043_v34 = vadd.f32 %v1138_v22, %v1042_v33 }
 0x5f3   :  { %1106 = vst [vmem:[#allocation11 + $0x28] sm:$0xff] %v1048_v32 }
 0x5f4   :  { %1105 = vst [vmem:[#allocation11 + $0x20] sm:$0xff] %v1043_v34  ;;  %v1654_v35 = vpop.f32.mrb[38].mxu1 }
 0x5f5   :  { %v1058_v36 = vadd.f32 %v1654_v35, %v1138_v22  ;;  %v1052_v1 = vpop.f32.mrb[39].mxu1 }
 0x5f6   :  { %v1053_v2 = vadd.f32 %v1138_v22, %v1052_v1 }
 0x5f7   :  { %1108 = vst [vmem:[#allocation11 + $0x38] sm:$0xff] %v1058_v36 }
 0x5f8   :  { %1107 = vst [vmem:[#allocation11 + $0x30] sm:$0xff] %v1053_v2  ;;  %v1657_v3 = vpop.f32.mrb[40].mxu1 }
 0x5f9   :  { %v1068_v4 = vadd.f32 %v1657_v3, %v1138_v22  ;;  %v1062_v5 = vpop.f32.mrb[41].mxu1 }
 0x5fa   :  { %v1063_v6 = vadd.f32 %v1138_v22, %v1062_v5 }
 0x5fb   :  { %1110 = vst [vmem:[#allocation11 + $0x48] sm:$0xff] %v1068_v4 }
 0x5fc   :  { %1109 = vst [vmem:[#allocation11 + $0x40] sm:$0xff] %v1063_v6  ;;  %v1660_v7 = vpop.f32.mrb[42].mxu1 }
 0x5fd   :  { %v1078_v8 = vadd.f32 %v1660_v7, %v1138_v22  ;;  %v1072_v9 = vpop.f32.mrb[43].mxu1 }
 0x5fe   :  { %v1073_v10 = vadd.f32 %v1138_v22, %v1072_v9 }
 0x5ff   :  { %1112 = vst [vmem:[#allocation11 + $0x58] sm:$0xff] %v1078_v8 }
 0x600   :  { %1111 = vst [vmem:[#allocation11 + $0x50] sm:$0xff] %v1073_v10  ;;  %v1663_v11 = vpop.f32.mrb[44].mxu1 }
 0x601   :  { %v1088_v12 = vadd.f32 %v1663_v11, %v1138_v22  ;;  %v1082_v13 = vpop.f32.mrb[45].mxu1 }
 0x602   :  { %v1083_v14 = vadd.f32 %v1138_v22, %v1082_v13 }
 0x603   :  { %1114 = vst [vmem:[#allocation11 + $0x68] sm:$0xff] %v1088_v12 }
 0x604   :  { %1113 = vst [vmem:[#allocation11 + $0x60] sm:$0xff] %v1083_v14  ;;  %v1666_v15 = vpop.f32.mrb[46].mxu1 }
 0x605   :  { %v1098_v16 = vadd.f32 %v1666_v15, %v1138_v22  ;;  %v1092_v17 = vpop.f32.mrb[47].mxu1 }
 0x606   :  { %v1093_v18 = vadd.f32 %v1138_v22, %v1092_v17 }
 0x607   :  { %1116 = vst [vmem:[#allocation11 + $0x78] sm:$0xff] %v1098_v16 }
 0x608   :  { %1115 = vst [vmem:[#allocation11 + $0x70] sm:$0xff] %v1093_v18 }
 0x609   :  { %1988 = shalt.err (!%p1985_p2)
}
 0x60a   :  { %s1989_s29 = scalar_lea.hbm %s2261_s8, 2048 }
 0x60b   :  { %p1990_p3 = scmp.ne.s32.totalorder %s2261_s8, %s1989_s29  ;;  %p1993_p4 = scmp.lt.u32.totalorder %s1989_s29, %s2261_s8 }
 0x60d   :  { %p1995_p5 = pnand %p1993_p4, %p1990_p3 }
 0x60f   :  { %1998 = shalt.err (!%p1995_p5)
}
 0x610   :  { %1128 = dma.vmem_to_hbm [thread:$0]  %s1123_s24, 2048, %s2261_s8, [#allocation4], %s2009_s17, %s2009_s17, %s2010_s18  }
 0x611   :  { %2005 = dma.done.wait [#allocation4], 2048  }
 0x612   :  { %2006 = vsyncadd [#allocation4], 4294965248 }
 0x613   :  { %1132 = vsyncpa [#allocation3], 1 }
 0x614   :  { %1133 = vsyncpa [#allocation6], 1 }
 0x615   :  { %1134 = vsyncpa [#allocation9], 1 }
 0x616   :  { %1135 = vsyncpa [#allocation4], 1 }

</bundles_post_ra>
